<compile_context>
chip_gen: v7x
topology: tpu7x:2x2x1
jax: 0.10.0
libtpu: 0.0.40
codegen_flags: <defaults>
</compile_context>

<pallas_src>
import functools

import jax
import jax.numpy as jnp
from jax.experimental import pallas as pl
from jax.experimental.pallas import tpu as pltpu


def _round_up(x, m):
    return ((x + m - 1) // m) * m


def _linear_relu_kernel_f32out(x_ref, w_ref, b_ref, o_ref):
    """f32 output: accumulate directly into the resident output tile."""
    k = pl.program_id(2)

    @pl.when(k == 0)
    def _init():
        o_ref[...] = jnp.zeros_like(o_ref)

    o_ref[...] += jnp.dot(
        x_ref[...], w_ref[...], preferred_element_type=jnp.float32
    )

    @pl.when(k == pl.num_programs(2) - 1)
    def _finalize():
        o_ref[...] = jnp.maximum(o_ref[...] + b_ref[...], 0.0)


def _linear_relu_kernel_acc(x_ref, w_ref, b_ref, o_ref, acc_ref):
    """Low-precision output: f32 VMEM accumulator, cast once on last K step."""
    k = pl.program_id(2)

    @pl.when(k == 0)
    def _init():
        acc_ref[...] = jnp.zeros_like(acc_ref)

    acc_ref[...] += jnp.dot(
        x_ref[...], w_ref[...], preferred_element_type=jnp.float32
    )

    @pl.when(k == pl.num_programs(2) - 1)
    def _finalize():
        out = acc_ref[...] + b_ref[...]
        o_ref[...] = jnp.maximum(out, 0.0).astype(o_ref.dtype)


def _linear_relu_pallas(x_p, w_p, b_p, out_dtype, tm, tn, tk):
    """pallas_call on already-padded operands. b_p is (1, n_p) float32."""
    m_p, k_p = x_p.shape
    _, n_p = w_p.shape
    grid = (m_p // tm, n_p // tn, k_p // tk)

    f32_out = jnp.dtype(out_dtype) == jnp.float32
    kernel = _linear_relu_kernel_f32out if f32_out else _linear_relu_kernel_acc
    scratch = [] if f32_out else [pltpu.VMEM((tm, tn), jnp.float32)]

    in_bytes = x_p.dtype.itemsize
    out_bytes = jnp.dtype(out_dtype).itemsize
    # double-buffered X/W/bias tiles + (optional) acc scratch + buffered output
    footprint = (
        2 * (tm * tk + tk * tn) * in_bytes
        + 2 * tn * 4
        + (0 if f32_out else tm * tn * 4)
        + 2 * tm * tn * out_bytes
    )
    # Explicit budget (v5e scoped default is only 16 MiB); cap 48 MiB so the
    # same config is safe on v7x's 64 MiB physical VMEM.
    vmem_limit = int(min(max(footprint * 5 // 4, 32 * 2**20), 48 * 2**20))

    return pl.pallas_call(
        kernel,
        out_shape=jax.ShapeDtypeStruct((m_p, n_p), out_dtype),
        grid_spec=pltpu.PrefetchScalarGridSpec(
            num_scalar_prefetch=0,
            grid=grid,
            in_specs=[
                pl.BlockSpec((tm, tk), lambda i, j, k: (i, k)),  # X tile
                pl.BlockSpec((tk, tn), lambda i, j, k: (k, j)),  # W tile
                pl.BlockSpec((1, tn), lambda i, j, k: (0, j)),   # bias tile
            ],
            # Same (i, j) across k -> output tile stays resident across K.
            out_specs=pl.BlockSpec((tm, tn), lambda i, j, k: (i, j)),
            scratch_shapes=scratch,
        ),
        compiler_params=pltpu.CompilerParams(
            dimension_semantics=("parallel", "parallel", "arbitrary"),
            vmem_limit_bytes=vmem_limit,
        ),
    )(x_p, w_p, b_p)


def _choose_tiles(batch, in_units, units, op_dtype, tm, tn, tk):
    itemsize = jnp.dtype(op_dtype).itemsize
    m_align = 8 if itemsize >= 4 else 16  # sublane packing (16 for bf16)
    tm = min(tm, _round_up(batch, m_align))
    tn = min(tn, _round_up(units, 128))    # lane-dense N tile
    tk = min(tk, _round_up(in_units, 128))  # lane-dense K tile
    m_p = _round_up(batch, tm)
    n_p = _round_up(units, tn)
    # v7x megacore: keep >= 2 blocks along a parallel axis when possible.
    if m_p // tm == 1 and n_p // tn == 1 and tn >= 256 and tn % 256 == 0:
        tn //= 2
        n_p = _round_up(units, tn)
    k_p = _round_up(in_units, tk)
    return tm, tn, tk, m_p, n_p, k_p


def _pad_params(weight, bias, tn, tk):
    in_units, units = weight.shape
    k_p = _round_up(in_units, tk)
    n_p = _round_up(units, tn)
    w_p = weight
    if (k_p, n_p) != (in_units, units):
        w_p = jnp.pad(weight, ((0, k_p - in_units), (0, n_p - units)))
    b_p = bias.reshape(1, units).astype(jnp.float32)  # bias stays f32
    if n_p != units:
        b_p = jnp.pad(b_p, ((0, 0), (0, n_p - units)))
    return w_p, b_p


def my_linear(x, weight, bias, *, tm=512, tn=512, tk=1024, compute_dtype=None):
    """relu(x @ weight + bias) via a tiled, pipelined Pallas TPU kernel.

    compute_dtype=jnp.bfloat16 halves HBM traffic / uses the bf16 MXU peak
    (accumulation, bias-add and ReLU remain f32; output keeps x.dtype).
    """
    batch, in_units = x.shape
    in_units_w, units = weight.shape
    assert in_units == in_units_w
    assert bias.shape == (units,)

    out_dtype = x.dtype
    op_dtype = jnp.dtype(compute_dtype) if compute_dtype is not None else x.dtype

    tm, tn, tk, m_p, n_p, k_p = _choose_tiles(
        batch, in_units, units, op_dtype, tm, tn, tk)

    x_p = x.astype(op_dtype)
    if (m_p, k_p) != (batch, in_units):
        x_p = jnp.pad(x_p, ((0, m_p - batch), (0, k_p - in_units)))
    w_p, b_p = _pad_params(weight.astype(op_dtype), bias, tn, tk)

    out = _linear_relu_pallas(x_p, w_p, b_p, out_dtype, tm, tn, tk)
    if (m_p, n_p) != (batch, units):
        out = out[:batch, :units]
    return out


def make_my_linear(weight, bias, *, tm=512, tn=512, tk=1024, compute_dtype=None):
    """Factory: pads W/b ONCE (hoisted out of the per-call path), returns a
    jitted forward fn(x) -> relu(x @ W + b)."""
    in_units, units = weight.shape
    op_dtype = jnp.dtype(compute_dtype) if compute_dtype is not None else weight.dtype
    itemsize = jnp.dtype(op_dtype).itemsize
    m_align = 8 if itemsize >= 4 else 16

    tn_ = min(tn, _round_up(units, 128))
    tk_ = min(tk, _round_up(in_units, 128))
    n_p = _round_up(units, tn_)
    if n_p // tn_ == 1 and tn_ >= 256 and tn_ % 256 == 0:
        tn_ //= 2
        n_p = _round_up(units, tn_)
    k_p = _round_up(in_units, tk_)

    w_p, b_p = _pad_params(weight.astype(op_dtype), bias, tn_, tk_)

    @jax.jit
    def fwd(x):
        batch, in_units_x = x.shape
        assert in_units_x == in_units
        out_dtype = x.dtype
        tm_ = min(tm, _round_up(batch, m_align))
        m_p = _round_up(batch, tm_)
        x_p = x.astype(op_dtype)
        if (m_p, k_p) != (batch, in_units):
            x_p = jnp.pad(x_p, ((0, m_p - batch), (0, k_p - in_units)))
        out = _linear_relu_pallas(x_p, w_p, b_p, out_dtype, tm_, tn_, tk_)
        if (m_p, n_p) != (batch, units):
            out = out[:batch, :units]
        return out

    return fwd


if __name__ == "__main__":
    key = jax.random.PRNGKey(0)
    k_x, k_w, k_b, k_x2, k_w2, k_b2 = jax.random.split(key, 6)

    # Small shapes consistent with the module's forward: X [batch, in_units].
    batch, in_units, units = 8, 32, 64
    x = jax.random.normal(k_x, (batch, in_units), dtype=jnp.float32)
    weight = jax.random.normal(k_w, (in_units, units), dtype=jnp.float32)
    bias = jax.random.normal(k_b, (units,), dtype=jnp.float32)

    fwd = make_my_linear(weight, bias)  # W/b padding hoisted, jitted forward
    out = jax.block_until_ready(fwd(x))
    ref = jnp.maximum(jnp.dot(x, weight) + bias, 0.0)
    assert out.shape == (batch, units)
    assert jnp.allclose(out, ref, atol=1e-5, rtol=1e-5)

    # Ragged shapes forcing a multi-block (M, N, K) grid: exercises K-axis
    # accumulation, zero-padding and output slicing.
    b2n, k2n, n2n = 136, 300, 200
    x2 = jax.random.normal(k_x2, (b2n, k2n), dtype=jnp.float32)
    w2 = jax.random.normal(k_w2, (k2n, n2n), dtype=jnp.float32)
    bias2 = jax.random.normal(k_b2, (n2n,), dtype=jnp.float32)
    fwd2 = jax.jit(functools.partial(my_linear, tm=64, tn=128, tk=128))
    out2 = jax.block_until_ready(fwd2(x2, w2, bias2))
    ref2 = jnp.maximum(jnp.dot(x2, w2) + bias2, 0.0)
    assert out2.shape == (b2n, n2n)
    assert jnp.allclose(out2, ref2, atol=2e-4, rtol=2e-4)

    print("KERNEL_OK")
</pallas_src>

<mosaic_0001>
module attributes {stable_mosaic.version = 11 : i64} {
  func.func @_linear_relu_kernel_f32out(%arg0: i32, %arg1: i32, %arg2: i32, %arg3: memref<8x128xf32, #tpu.memory_space<vmem>>, %arg4: memref<128x128xf32, #tpu.memory_space<vmem>>, %arg5: memref<1x128xf32, #tpu.memory_space<vmem>>, %arg6: memref<8x128xf32, #tpu.memory_space<vmem>>) attributes {dimension_semantics = [#tpu.dimension_semantics<parallel>, #tpu.dimension_semantics<parallel>, #tpu.dimension_semantics<arbitrary>], iteration_bounds = array<i64: 1, 1, 1>, scalar_prefetch = 0 : i64, scratch_operands = 0 : i64, tpu.core_type = #tpu.core_type<tc>, window_params = [{transform_indices = @transform_0, window_bounds = array<i64: 8, 128>}, {transform_indices = @transform_1, window_bounds = array<i64: 128, 128>}, {transform_indices = @transform_2, window_bounds = array<i64: 1, 128>}, {transform_indices = @transform_3, window_bounds = array<i64: 8, 128>}]} {
    %c0_i32 = arith.constant 0 : i32
    %0 = arith.cmpi eq, %arg2, %c0_i32 : i32
    %1 = arith.extui %0 : i1 to i32
    %c0_i32_0 = arith.constant 0 : i32
    %2 = arith.cmpi ne, %1, %c0_i32_0 : i32
    scf.if %2 {
      %cst_10 = arith.constant 0.000000e+00 : f32
      %12 = vector.broadcast %cst_10 : f32 to vector<8x128xf32>
      %c0_11 = arith.constant 0 : index
      %c0_12 = arith.constant 0 : index
      %13 = vector.load %arg6[%c0_11, %c0_12] : memref<8x128xf32, #tpu.memory_space<vmem>>, vector<8x128xf32>
      tpu.vector_store %arg6[%c0_11, %c0_12], %12 {strides = array<i32>} : memref<8x128xf32, #tpu.memory_space<vmem>>, vector<8x128xf32>,
    } else {
    }
    %c0 = arith.constant 0 : index
    %c0_1 = arith.constant 0 : index
    %3 = vector.load %arg6[%c0, %c0_1] : memref<8x128xf32, #tpu.memory_space<vmem>>, vector<8x128xf32>
    %c0_2 = arith.constant 0 : index
    %c0_3 = arith.constant 0 : index
    %4 = vector.load %arg3[%c0_2, %c0_3] : memref<8x128xf32, #tpu.memory_space<vmem>>, vector<8x128xf32>
    %c0_4 = arith.constant 0 : index
    %c0_5 = arith.constant 0 : index
    %5 = vector.load %arg4[%c0_4, %c0_5] : memref<128x128xf32, #tpu.memory_space<vmem>>, vector<128x128xf32>
    %cst = arith.constant dense<0.000000e+00> : vector<8x128xf32>
    %6 = tpu.matmul %4, %5, %cst {dimension_numbers = #tpu.dot_dimension_numbers<[1], [0], [0], [1], [0, 0, 1, 1], [], []>} : vector<8x128xf32>, vector<128x128xf32>, vector<8x128xf32> -> vector<8x128xf32>
    %7 = arith.addf %3, %6 : vector<8x128xf32>
    %c0_6 = arith.constant 0 : index
    %c0_7 = arith.constant 0 : index
    %8 = vector.load %arg6[%c0_6, %c0_7] : memref<8x128xf32, #tpu.memory_space<vmem>>, vector<8x128xf32>
    tpu.vector_store %arg6[%c0_6, %c0_7], %7 {strides = array<i32>} : memref<8x128xf32, #tpu.memory_space<vmem>>, vector<8x128xf32>,
    %c0_i32_8 = arith.constant 0 : i32
    %9 = arith.cmpi eq, %arg2, %c0_i32_8 : i32
    %10 = arith.extui %9 : i1 to i32
    %c0_i32_9 = arith.constant 0 : i32
    %11 = arith.cmpi ne, %10, %c0_i32_9 : i32
    scf.if %11 {
      %c0_10 = arith.constant 0 : index
      %c0_11 = arith.constant 0 : index
      %12 = vector.load %arg6[%c0_10, %c0_11] : memref<8x128xf32, #tpu.memory_space<vmem>>, vector<8x128xf32>
      %c0_12 = arith.constant 0 : index
      %c0_13 = arith.constant 0 : index
      %13 = vector.load %arg5[%c0_12, %c0_13] : memref<1x128xf32, #tpu.memory_space<vmem>>, vector<1x128xf32>
      %14 = vector.broadcast %13 : vector<1x128xf32> to vector<8x128xf32>
      %15 = arith.addf %12, %14 : vector<8x128xf32>
      %cst_14 = arith.constant 0.000000e+00 : f32
      %16 = vector.broadcast %cst_14 : f32 to vector<8x128xf32>
      %17 = arith.maximumf %15, %16 : vector<8x128xf32>
      %c0_15 = arith.constant 0 : index
      %c0_16 = arith.constant 0 : index
      %18 = vector.load %arg6[%c0_15, %c0_16] : memref<8x128xf32, #tpu.memory_space<vmem>>, vector<8x128xf32>
      tpu.vector_store %arg6[%c0_15, %c0_16], %17 {strides = array<i32>} : memref<8x128xf32, #tpu.memory_space<vmem>>, vector<8x128xf32>,
    } else {
    }
    return
  }
  func.func @transform_0(%arg0: i32, %arg1: i32, %arg2: i32) -> (i32, i32) {
    %c0_i32 = arith.constant 0 : i32
    return %arg0, %arg2 : i32, i32
  }
  func.func @transform_1(%arg0: i32, %arg1: i32, %arg2: i32) -> (i32, i32) {
    %c0_i32 = arith.constant 0 : i32
    return %arg2, %arg1 : i32, i32
  }
  func.func @transform_2(%arg0: i32, %arg1: i32, %arg2: i32) -> (i32, i32) {
    %c0_i32 = arith.constant 0 : i32
    %c0_i32_0 = arith.constant 0 : i32
    return %c0_i32, %arg1 : i32, i32
  }
  func.func @transform_3(%arg0: i32, %arg1: i32, %arg2: i32) -> (i32, i32) {
    %c0_i32 = arith.constant 0 : i32
    return %arg0, %arg1 : i32, i32
  }
}

</mosaic_0001>

<bundles_post_ra>
// kernel: fwd.1
= control target key start
LH: loop header
LB: loop body
LE: loop exit
PB: predicated region body
PF: predicated region fallthrough
CT: control target
= control target key end

     0   :  { %8 = vsyncpa [#allocation3], 0  ;;  %s342_s0 = inlined_call_operand.vmem [shape: f32[8,128], index: 0, kind: input, shape index: {}]   ;;  %s343_s1 = inlined_call_operand.hbm [shape: f32[128,128], index: 1, kind: input, shape index: {}]   ;;  %s344_s2 = inlined_call_operand.vmem [shape: f32[1,128], index: 2, kind: input, shape index: {}]   ;;  %s345_s3 = inlined_call_operand.hbm [shape: f32[8,128], index: 3, kind: output, shape index: {}]  }
   0x1   :  { %9 = vsyncpa [#allocation4], 0  ;;  %s285_s12 = smov [#allocation2]   ;;  %s237_s16 = scalar_lea.hbm %s343_s1, 2048 }
   0x2   :  { %s17_s13 = sshll.u32 %s285_s12, 4  ;;  %p238_p0 = scmp.ne.s32.totalorder %s343_s1, %s237_s16  ;;  %s18_s13 = int_to_ptr.vmem [resolvable:$true] %s17_s13 }
   0x3   :  { %p241_p1 = scmp.lt.u32.totalorder %s237_s16, %s343_s1 }
   0x5   :  { %p243_p2 = pnand %p241_p1, %p238_p0 }
   0x7   :  { %246 = shalt.err (!%p243_p2)
}
   0x8   :  { %s247_s21 = scalar_lea.vmem %s18_s13, 2048  ;;  %p252_p4 = scmp.lt.s32.totalorder %s18_s13, %s18_s13 }
   0x9   :  { %p248_p3 = scmp.ne.s32.totalorder %s18_s13, %s247_s21  ;;  %p253_p5 = scmp.lt.s32.totalorder %s247_s21, %s247_s21 }
   0xb   :  { %p254_p6 = por %p253_p5, %p252_p4 }
   0xd   :  { %p255_p7 = pnand %p254_p6, %p248_p3 }
   0xf   :  { %258 = shalt.err (!%p255_p7)
}
  0x10   :  { %s286_s22 = smov 128   ;;  %s287_s23 = smov 8  }
  0x11   :  { %23 = dma.hbm_to_vmem [thread:$0]  %s343_s1, 2048, %s18_s13, [#allocation3], %s286_s22, %s286_s22, %s287_s23  }
  0x12   :  { %281 = dma.done.wait [#allocation3], 2048  }
  0x13   :  { %282 = vsyncadd [#allocation3], 4294965248  ;;  %v288_v0 = vmov 0.0|0.0   ;;  %vm289_vm0 = vmmov 0   ;;  %v290_v1 = vmov 0.0   ;;  %v36_v2 = vld [vmem:[#allocation2] sm:$0xff] }
  0x14   :  { %206 = vmatprep.subr.bf16.mxu0 %v288_v0  ;;  %203 = vmatprep.mubr.msk.f32.mxu0 %vm289_vm0, %v290_v1  ;;  %v37_v3 = vld [vmem:[#allocation2 + $0x8] sm:$0xff]  ;;  %v38_v4 = vld [vmem:[#allocation2 + $0x10] sm:$0xff]  ;;  %v39_v6 = vld [vmem:[#allocation2 + $0x18] sm:$0xff]  ;;  %s291_s29 = smov [#allocation5]  }
  0x15   :  { %v207_v5 = vpack.c.bf16 %v37_v3, %v36_v2  ;;  %v210_v7 = vpack.c.bf16 %v39_v6, %v38_v4  ;;  %v40_v8 = vld [vmem:[#allocation2 + $0x20] sm:$0xff]  ;;  %v41_v9 = vld [vmem:[#allocation2 + $0x28] sm:$0xff]  ;;  %v42_v11 = vld [vmem:[#allocation2 + $0x30] sm:$0xff]  ;;  %s144_s30 = sshll.u32 %s291_s29, 4  ;;  %s145_s30 = int_to_ptr.vmem [resolvable:$true] %s144_s30 }
  0x16   :  { %v213_v10 = vpack.c.bf16 %v41_v9, %v40_v8  ;;  %v43_v12 = vld [vmem:[#allocation2 + $0x38] sm:$0xff]  ;;  %v44_v14 = vld [vmem:[#allocation2 + $0x40] sm:$0xff]  ;;  %v45_v15 = vld [vmem:[#allocation2 + $0x48] sm:$0xff]  ;;  %s259_s4 = scalar_lea.vmem %s145_s30, 128  ;;  %p264_p9 = scmp.lt.s32.totalorder %s145_s30, %s145_s30 }
  0x17   :  { %208 = vmatpush3.bf16.msra.mxu0 %v207_v5  ;;  %v216_v13 = vpack.c.bf16 %v43_v12, %v42_v11  ;;  %v219_v16 = vpack.c.bf16 %v45_v15, %v44_v14  ;;  %v46_v17 = vld [vmem:[#allocation2 + $0x50] sm:$0xff]  ;;  %v47_v18 = vld [vmem:[#allocation2 + $0x58] sm:$0xff]  ;;  %v48_v20 = vld [vmem:[#allocation2 + $0x60] sm:$0xff]  ;;  %p260_p8 = scmp.ne.s32.totalorder %s145_s30, %s259_s4  ;;  %p265_p10 = scmp.lt.s32.totalorder %s259_s4, %s259_s4 }
  0x18   :  { %209 = vmatprep.subr.bf16.mxu0 %v288_v0  ;;  %v222_v19 = vpack.c.bf16 %v47_v18, %v46_v17  ;;  %v49_v21 = vld [vmem:[#allocation2 + $0x68] sm:$0xff]  ;;  %v50_v23 = vld [vmem:[#allocation2 + $0x70] sm:$0xff]  ;;  %v51_v24 = vld [vmem:[#allocation2 + $0x78] sm:$0xff] }
  0x19   :  { %v225_v22 = vpack.c.bf16 %v49_v21, %v48_v20  ;;  %v228_v25 = vpack.c.bf16 %v51_v24, %v50_v23  ;;  %v35_v26 = vld [vmem:[%s342_s0] sm:$0xff]  ;;  %p266_p11 = por %p265_p10, %p264_p9 }
  0x1a   :  { %v153_v28 = vld [vmem:[%s344_s2] ss:$0 sm:$0xff] }
  0x1b   :  { %211 = vmatpush3.bf16.msra.mxu0 %v210_v7  ;;  %p267_p12 = pnand %p266_p11, %p260_p8 }
  0x1c   :  { %212 = vmatprep.subr.bf16.mxu0 %v288_v0 }
  0x1f   :  { %214 = vmatpush3.bf16.msra.mxu0 %v213_v10 }
  0x20   :  { %215 = vmatprep.subr.bf16.mxu0 %v288_v0 }
  0x23   :  { %217 = vmatpush3.bf16.msra.mxu0 %v216_v13 }
  0x24   :  { %218 = vmatprep.subr.bf16.mxu0 %v288_v0 }
  0x27   :  { %220 = vmatpush3.bf16.msra.mxu0 %v219_v16 }
  0x28   :  { %221 = vmatprep.subr.bf16.mxu0 %v288_v0 }
  0x2b   :  { %223 = vmatpush3.bf16.msra.mxu0 %v222_v19 }
  0x2c   :  { %224 = vmatprep.subr.bf16.mxu0 %v288_v0 }
  0x2f   :  { %226 = vmatpush3.bf16.msra.mxu0 %v225_v22 }
  0x30   :  { %227 = vmatprep.subr.bf16.mxu0 %v288_v0 }
  0x33   :  { %229 = vmatpush3.bf16.msra.mxu0 %v228_v25 }
  0x36   :  { %204 = vmatmul.mubr.f32.vlgmr.msra.gmra.mrb[0].mxu0 %v35_v26 }
 0x109   :  { %v118_v27 = vpop.f32.mrb[0].mxu0 }
 0x10a   :  { %v205_v29 = vpop.f32.mrb[1].mxu0  ;;  %v135_v30 = vadd.f32 %v153_v28, %v118_v27 }
 0x10c   :  { %v136_v31 = vmax.f32 %v135_v30, 0.0 }
 0x10e   :  { %137 = vst [vmem:[#allocation5] sm:$0xff] %v136_v31 }
 0x10f   :  { %270 = shalt.err (!%p267_p12)
}
 0x110   :  { %s271_s6 = scalar_lea.hbm %s345_s3, 128 }
 0x111   :  { %p272_p13 = scmp.ne.s32.totalorder %s345_s3, %s271_s6  ;;  %p275_p0 = scmp.lt.u32.totalorder %s271_s6, %s345_s3 }
 0x113   :  { %p277_p1 = pnand %p275_p0, %p272_p13 }
 0x115   :  { %280 = shalt.err (!%p277_p1)
}
 0x116   :  { %147 = dma.vmem_to_hbm [thread:$0]  %s145_s30, 128, %s345_s3, [#allocation4]  }
 0x117   :  { %283 = dma.done.wait [#allocation4], 128  }
 0x118   :  { %284 = vsyncadd [#allocation4], 4294967168 }
 0x119   :  { %151 = vsyncpa [#allocation3], 1 }
 0x11a   :  { %152 = vsyncpa [#allocation4], 1 }

</bundles_post_ra>
